<compile_context>
chip_gen: v5e
topology: v5e:2x2
jax: 0.10.0
libtpu: 0.0.40
codegen_flags: <defaults>
</compile_context>

<pallas_src>
import math

import jax
import jax.numpy as jnp
from jax.experimental import pallas as pl
from jax.experimental.pallas import tpu as pltpu

IN_FEATURES = 41
OUT_FEATURES = 23

_MIN_GRID_STEPS = 8   # enough steps for v7x megacore sharding + pipeline ramp
_MAX_TB = 4096        # lane-padded (TB,128) f32 double-buffers ~ 12.6 MiB total


def _round_up(n, m):
    return ((n + m - 1) // m) * m


def kdd_kernel(x_ref, w_ref, b_ref, o_ref):
    """Fused linear + log_softmax over one batch tile.

    x_ref: (TB, 41)  f32
    w_ref: (41, 23)  f32  (PyTorch weight transposed -> y = x @ W.T + b)
    b_ref: (1, 23)   f32
    o_ref: (TB, 23)  = log_softmax(x @ w + b, axis=-1), cast to o_ref.dtype
    """
    # MXU matmul with f32 accumulation.
    z = jnp.dot(x_ref[...], w_ref[...], preferred_element_type=jnp.float32)
    z = z + b_ref[...]  # broadcast bias over batch rows

    # Numerically-stable log_softmax along the class (last / lane) axis.
    m = jnp.max(z, axis=-1, keepdims=True)
    shifted = z - m
    lse = jnp.log(jnp.sum(jnp.exp(shifted), axis=-1, keepdims=True))
    o_ref[...] = (shifted - lse).astype(o_ref.dtype)


def kdd_forward(x, w_t, b, *, tb=_MAX_TB, out_dtype=jnp.float32):
    """x: (B, 41); w_t: (41, 23); b: (1, 23) -> (B, 23) log-probs.

    Streams the batch through a (TB, 41) -> (TB, 23) pipelined grid with a
    ragged (Pallas-masked) last block; weight and bias stay VMEM-resident.
    """
    B = x.shape[0]

    # Tile size: multiple of 8 sublanes, sized so the grid has at least
    # _MIN_GRID_STEPS steps when B allows it, capped at `tb` for VMEM.
    TB = _round_up(max(pl.cdiv(B, _MIN_GRID_STEPS), 1), 8)
    TB = min(TB, max(_round_up(tb, 8), 8))
    grid = (pl.cdiv(B, TB),)

    # Advisory cost hint for XLA's scheduler around the custom call.
    cost = pl.CostEstimate(
        flops=2 * B * IN_FEATURES * OUT_FEATURES + 5 * B * OUT_FEATURES,
        transcendentals=(OUT_FEATURES + 1) * B,  # 23 exps + 1 log per row
        bytes_accessed=4 * (B * (IN_FEATURES + OUT_FEATURES)
                            + IN_FEATURES * OUT_FEATURES + OUT_FEATURES),
    )

    # Scoped-VMEM limit with headroom: x + out double-buffers, lane-padded to
    # 128 lanes, plus resident weight/bias (tiny).  Capped below v7x physical.
    lane_padded_tile_bytes = TB * 128 * 4
    vmem_limit = min(max(6 * lane_padded_tile_bytes, 16 << 20), 48 << 20)

    return pl.pallas_call(
        kdd_kernel,
        out_shape=jax.ShapeDtypeStruct((B, OUT_FEATURES), out_dtype),
        grid=grid,
        in_specs=[
            pl.BlockSpec((TB, IN_FEATURES), lambda i: (i, 0)),
            pl.BlockSpec((IN_FEATURES, OUT_FEATURES), lambda i: (0, 0)),
            pl.BlockSpec((1, OUT_FEATURES), lambda i: (0, 0)),
        ],
        out_specs=pl.BlockSpec((TB, OUT_FEATURES), lambda i: (i, 0)),
        compiler_params=pltpu.CompilerParams(
            dimension_semantics=("parallel",),  # megacore on v7x; no-op elsewhere
            vmem_limit_bytes=vmem_limit,
        ),
        cost_estimate=cost,
    )(x, w_t, b)


def init_params(key):
    """Deterministic nn.Linear-style init: U(-1/sqrt(fan_in), 1/sqrt(fan_in))."""
    k_w, k_b = jax.random.split(key)
    bound = 1.0 / math.sqrt(IN_FEATURES)
    # PyTorch stores weight as (out, in); we keep the transposed (in, out) layout.
    w_t = jax.random.uniform(
        k_w, (IN_FEATURES, OUT_FEATURES), jnp.float32, minval=-bound, maxval=bound
    )
    b = jax.random.uniform(
        k_b, (1, OUT_FEATURES), jnp.float32, minval=-bound, maxval=bound
    )
    return w_t, b


if __name__ == "__main__":
    key = jax.random.PRNGKey(0)
    k_x, k_x2, k_x3, k_p = jax.random.split(key, 4)
    w_t, b = init_params(k_p)

    # Small batch (features fixed by the module: 41 in, 23 out).
    B = 8
    x = jax.random.normal(k_x, (B, IN_FEATURES), jnp.float32)
    out = jax.block_until_ready(kdd_forward(x, w_t, b))
    ref = jax.nn.log_softmax(x @ w_t + b, axis=-1)
    assert out.shape == (B, OUT_FEATURES)
    assert jnp.allclose(out, ref, atol=1e-5, rtol=1e-5)

    # Multi-step tiled grid with a ragged (masked) last block, no wrapper pad.
    B2 = 1000
    x2 = jax.random.normal(k_x2, (B2, IN_FEATURES), jnp.float32)
    out2 = jax.block_until_ready(kdd_forward(x2, w_t, b, tb=256))
    ref2 = jax.nn.log_softmax(x2 @ w_t + b, axis=-1)
    assert out2.shape == (B2, OUT_FEATURES)
    assert jnp.allclose(out2, ref2, atol=1e-5, rtol=1e-5)

    # Batch not a multiple of 8: exercises the fully-ragged block path.
    B3 = 37
    x3 = jax.random.normal(k_x3, (B3, IN_FEATURES), jnp.float32)
    out3 = jax.block_until_ready(kdd_forward(x3, w_t, b))
    ref3 = jax.nn.log_softmax(x3 @ w_t + b, axis=-1)
    assert out3.shape == (B3, OUT_FEATURES)
    assert jnp.allclose(out3, ref3, atol=1e-5, rtol=1e-5)

    print("KERNEL_OK")
</pallas_src>

<mosaic_0001>
module attributes {stable_mosaic.version = 11 : i64} {
  func.func @kdd_kernel(%arg0: i32, %arg1: memref<8x41xf32, #tpu.memory_space<vmem>>, %arg2: memref<41x23xf32, #tpu.memory_space<vmem>>, %arg3: memref<1x23xf32, #tpu.memory_space<vmem>>, %arg4: memref<8x23xf32, #tpu.memory_space<vmem>>) attributes {dimension_semantics = [#tpu.dimension_semantics<parallel>], iteration_bounds = array<i64: 1>, scalar_prefetch = 0 : i64, scratch_operands = 0 : i64, tpu.core_type = #tpu.core_type<tc>, window_params = [{transform_indices = @transform_0, window_bounds = array<i64: 8, 41>}, {pipeline_mode = #tpu.pipeline_mode<synchronous>, transform_indices = @transform_1, window_bounds = array<i64: 41, 23>}, {pipeline_mode = #tpu.pipeline_mode<synchronous>, transform_indices = @transform_2, window_bounds = array<i64: 1, 23>}, {transform_indices = @transform_3, window_bounds = array<i64: 8, 23>}]} {
    %c0 = arith.constant 0 : index
    %c0_0 = arith.constant 0 : index
    %0 = vector.load %arg1[%c0, %c0_0] : memref<8x41xf32, #tpu.memory_space<vmem>>, vector<8x41xf32>
    %c0_1 = arith.constant 0 : index
    %c0_2 = arith.constant 0 : index
    %1 = vector.load %arg2[%c0_1, %c0_2] : memref<41x23xf32, #tpu.memory_space<vmem>>, vector<41x23xf32>
    %cst = arith.constant dense<0.000000e+00> : vector<8x23xf32>
    %2 = tpu.matmul %0, %1, %cst {dimension_numbers = #tpu.dot_dimension_numbers<[1], [0], [0], [1], [0, 0, 1, 1], [], []>} : vector<8x41xf32>, vector<41x23xf32>, vector<8x23xf32> -> vector<8x23xf32>
    %c0_3 = arith.constant 0 : index
    %c0_4 = arith.constant 0 : index
    %3 = vector.load %arg3[%c0_3, %c0_4] : memref<1x23xf32, #tpu.memory_space<vmem>>, vector<1x23xf32>
    %4 = vector.broadcast %3 : vector<1x23xf32> to vector<8x23xf32>
    %5 = arith.addf %2, %4 : vector<8x23xf32>
    %cst_5 = arith.constant dense<0xFF800000> : vector<8xf32>
    %6 = vector.multi_reduction <maximumf>, %5, %cst_5 [1] : vector<8x23xf32> to vector<8xf32>
    %7 = vector.shape_cast %6 : vector<8xf32> to vector<8x1xf32>
    %8 = vector.broadcast %7 : vector<8x1xf32> to vector<8x23xf32>
    %9 = arith.subf %5, %8 : vector<8x23xf32>
    %10 = math.exp %9 : vector<8x23xf32>
    %cst_6 = arith.constant dense<0.000000e+00> : vector<8xf32>
    %11 = vector.multi_reduction <add>, %10, %cst_6 [1] : vector<8x23xf32> to vector<8xf32>
    %12 = vector.shape_cast %11 : vector<8xf32> to vector<8x1xf32>
    %13 = math.log %12 : vector<8x1xf32>
    %14 = vector.broadcast %13 : vector<8x1xf32> to vector<8x23xf32>
    %15 = arith.subf %9, %14 : vector<8x23xf32>
    %c0_7 = arith.constant 0 : index
    %c0_8 = arith.constant 0 : index
    %16 = vector.load %arg4[%c0_7, %c0_8] : memref<8x23xf32, #tpu.memory_space<vmem>>, vector<8x23xf32>
    tpu.vector_store %arg4[%c0_7, %c0_8], %15 {strides = array<i32>} : memref<8x23xf32, #tpu.memory_space<vmem>>, vector<8x23xf32>,
    return
  }
  func.func @transform_0(%arg0: i32) -> (i32, i32) {
    %c0_i32 = arith.constant 0 : i32
    %c0_i32_0 = arith.constant 0 : i32
    return %arg0, %c0_i32 : i32, i32
  }
  func.func @transform_1(%arg0: i32) -> (i32, i32) {
    %c0_i32 = arith.constant 0 : i32
    %c0_i32_0 = arith.constant 0 : i32
    %c0_i32_1 = arith.constant 0 : i32
    return %c0_i32, %c0_i32_0 : i32, i32
  }
  func.func @transform_2(%arg0: i32) -> (i32, i32) {
    %c0_i32 = arith.constant 0 : i32
    %c0_i32_0 = arith.constant 0 : i32
    %c0_i32_1 = arith.constant 0 : i32
    return %c0_i32, %c0_i32_0 : i32, i32
  }
  func.func @transform_3(%arg0: i32) -> (i32, i32) {
    %c0_i32 = arith.constant 0 : i32
    %c0_i32_0 = arith.constant 0 : i32
    return %arg0, %c0_i32 : i32, i32
  }
}

</mosaic_0001>

<bundles_post_ra>
// kernel: tpu_custom_call.1
= control target key start
LH: loop header
LB: loop body
LE: loop exit
PB: predicated region body
PF: predicated region fallthrough
CT: control target
= control target key end

     0   :  { %vm30_vm0 = vcmask 1040384   ;;  %s169_s0 = inlined_call_operand.vmem [shape: f32[8,41], index: 0, kind: input, shape index: {}]   ;;  %s170_s1 = inlined_call_operand.vmem [shape: f32[41,23], index: 1, kind: input, shape index: {}]   ;;  %s171_s2 = inlined_call_operand.vmem [shape: f32[1,23], index: 2, kind: input, shape index: {}]   ;;  %s172_s3 = inlined_call_operand.hbm [shape: f32[8,23], index: 3, kind: output, shape index: {}]  }
   0x1   :  { %v21_v0 = vld [vmem:[%s170_s1 + $0x28] sm:$0x1]  ;;  %v20_v1 = vld [vmem:[%s170_s1 + $0x20] sm:$0xff]  ;;  %v19_v2 = vld [vmem:[%s170_s1 + $0x18] sm:$0xff] }
   0x2   :  { %84 = vmatpush.msk.msra.mxu0 %vm30_vm0, %v21_v0 }
   0x4   :  { %45 = vmatpush.msra.mxu0 %v20_v1 }
   0x5   :  { %8 = vsyncpa [#allocation3], 0  ;;  %v18_v3 = vld [vmem:[%s170_s1 + $0x10] sm:$0xff]  ;;  %v17_v4 = vld [vmem:[%s170_s1 + $0x8] sm:$0xff]  ;;  %vm26_vm1 = vcmask 334848   ;;  %vm54_vm2 = vcmask 187392  }
   0x6   :  { %46 = vmatpush.msra.mxu0 %v19_v2  ;;  %v16_v5 = vld [vmem:[%s170_s1] sm:$0xff]  ;;  %s75_s29 = sshll.u32 %s172_s3, 4  ;;  %s76_s29 = int_to_ptr.hbm [resolvable:$true] %s75_s29 }
   0x7   :  { %v15_v6 = vld [vmem:[%s169_s0] sm:$0xff]  ;;  %s118_s0 = smov [#allocation2]  }
   0x8   :  { %47 = vmatpush.msra.mxu0 %v18_v3  ;;  %v87_v7 = vld [vmem:[%s171_s2] ss:$0 sm:$0xff]  ;;  %s73_s1 = sshll.u32 %s118_s0, 4  ;;  %s74_s1 = int_to_ptr.vmem [resolvable:$true] %s73_s1 }
   0xa   :  { %48 = vmatpush.msra.mxu0 %v17_v4 }
   0xc   :  { %49 = vmatpush.msra.mxu0 %v16_v5 }
   0xd   :  { %85 = vmatmul.msk.f32.vlgmr.msra.gmra.mxu0 %vm26_vm1, %v15_v6 }
  0x8a   :  { %v51_v8 = vpop.f32.mrf.mxu0 }
  0x8b   :  { %v52_v9 = vadd.f32 %v87_v7, %v51_v8 }
  0x8d   :  { %v55_v10 = vsel %vm54_vm2, %v52_v9, -inf }
  0x8e   :  { %56 = vmax.xlane.f32.xlu0 %v55_v10 }
 0x101   :  { %v57_v11 = vpop.xlane.xlu0 %56 }
 0x102   :  { %v58_v12 = vsub.f32 %v52_v9, %v57_v11 }
 0x104   :  { %v59_v13 = vmul.f32 1.442695, %v58_v12 }
 0x106   :  { %88 = vpow2.f32 %v59_v13 }
 0x10c   :  { %v89_v14 = vpop.eup %88 }
 0x10d   :  { %v61_v15 = vsel %vm54_vm2, %v89_v14, 0.0 }
 0x10e   :  { %62 = vadd.xlane.f32.xlu0 %v61_v15 }
 0x181   :  { %v63_v16 = vpop.xlane.xlu0 %62 }
 0x182   :  { %90 = vlog2.f32 %v63_v16 }
 0x188   :  { %v91_v17 = vpop.eup %90 }
 0x189   :  { %v65_v18 = vmul.f32 0.6931472, %v91_v17 }
 0x18b   :  { %v66_v19 = vsub.f32 %v58_v12, %v65_v18 }
 0x18d   :  { %67 = vst.msk [vmem:[#allocation2] sm:$0xff] %vm54_vm2, %v66_v19 }
 0x18e   :  { %78 = dma.vmem_to_hbm [thread:$0]  %s74_s1, 128, %s76_s29, [#allocation3]  }
 0x18f   :  { %116 = dma.done.wait [#allocation3], 128  }
 0x190   :  { %117 = vsyncadd [#allocation3], 4294967168 }
 0x191   :  { %83 = vsyncpa [#allocation3], 1 }

</bundles_post_ra>
